<compile_context>
chip_gen: v6e
topology: v6e:2x2x1
jax: 0.10.0
libtpu: 0.0.40
codegen_flags: <defaults>
</compile_context>

<pallas_src>
import functools
import numpy as np
import jax
import jax.numpy as jnp
from jax import lax
from jax.experimental import pallas as pl
from jax.experimental.pallas import tpu as pltpu

# ---- module config (training-mode forward, produce_weight_type='dense') ----
CIF_THRESHOLD = 1.0
ENCODER_EMBED_DIM = 32
CIF_EMBEDDING_DIM = 32          # == encoder_embed_dim -> cif_output_proj branch is skipped
APPLY_SCALING = True            # training mode with target_lengths -> scaling applied
# TODO(synk): eval-mode tail handling (apply_tail_handling) and the 'conv' weight branch
# (Conv1d + dropout) are not exercised; this models the training-mode 'dense' forward only.


def _vmem_limit(nbytes):
    # explicit VMEM budget with headroom; keeps the kernel honest on v7x (64 MiB phys).
    return int(min(100 * 1024 * 1024, max(16 * 1024 * 1024, nbytes)))


# --------------------------------------------------------------------------------------
# Kernel A: fused weight branch + mask + quantity + scaling  (one grid step per utterance)
# --------------------------------------------------------------------------------------
def _weight_kernel(x_ref, npad_ref, tgt_smem, w1_ref, b1_ref, w2_ref, b2_ref,
                   w_out_ref, qty_ref):
    b = pl.program_id(0)
    x = x_ref[0]                                                          # (T, C)
    h = jnp.dot(x, w1_ref[...], preferred_element_type=jnp.float32) + b1_ref[...]
    h = jnp.maximum(h, 0.0)                                               # relu
    s = jnp.dot(h, w2_ref[...], preferred_element_type=jnp.float32) + b2_ref[...]
    sig = jax.nn.sigmoid(s)                                               # (T, 1)
    org_w = sig * npad_ref[0]                                             # masked weights
    qty = jnp.sum(org_w, axis=0, keepdims=True)                           # (1, 1) quantity_out
    qty_ref[0] = qty
    tgt = tgt_smem[b].astype(jnp.float32)                                 # scalar target length
    # guarded scaling: avoid inf/nan when an utterance is fully padded (qty == 0)
    scale = jnp.where(qty > 0.0, tgt / jnp.maximum(qty, 1e-6), 0.0)       # (1, 1)
    w_out_ref[0] = org_w * scale                                          # scaled weights (T, 1)


def weight_pallas(x, npad, tgt, w1, b1, w2, b2):
    B, T, C = x.shape
    return pl.pallas_call(
        _weight_kernel,
        out_shape=(jax.ShapeDtypeStruct((B, T, 1), jnp.float32),   # scaled weights
                   jax.ShapeDtypeStruct((B, 1, 1), jnp.float32)),  # quantity_out
        grid=(B,),
        in_specs=[
            pl.BlockSpec((1, T, C), lambda b: (b, 0, 0)),                  # x
            pl.BlockSpec((1, T, 1), lambda b: (b, 0, 0)),                  # not-padding (f32)
            pl.BlockSpec(memory_space=pltpu.MemorySpace.SMEM),             # target_lengths
            pl.BlockSpec((C, C), lambda b: (0, 0)),                        # dense_proj W^T
            pl.BlockSpec((1, C), lambda b: (0, 0)),                        # dense_proj bias
            pl.BlockSpec((C, 1), lambda b: (0, 0)),                        # weight_proj W^T
            pl.BlockSpec((1, 1), lambda b: (0, 0)),                        # weight_proj bias
        ],
        out_specs=(pl.BlockSpec((1, T, 1), lambda b: (b, 0, 0)),
                   pl.BlockSpec((1, 1, 1), lambda b: (b, 0, 0))),
        compiler_params=pltpu.CompilerParams(
            dimension_semantics=("parallel",),
            vmem_limit_bytes=_vmem_limit(6 * T * C * 4 + 4 * C * C * 4)),
    )(x, npad, tgt, w1, b1, w2, b2)


# --------------------------------------------------------------------------------------
# Kernel B: sequential CIF integrate-and-fire scan + in-kernel scatter compaction
# --------------------------------------------------------------------------------------
def _cif_scan_kernel(w_smem, pstart_smem, x_ref, cif_ref, cnt_ref, *, threshold):
    b = pl.program_id(0)
    T = x_ref.shape[1]
    C = x_ref.shape[2]
    cif_ref[...] = jnp.zeros_like(cif_ref)          # compacted output starts as zero padding
    pstart = pstart_smem[b]                         # padding_start_id (scalar, SMEM)

    def step(i, carry):
        acc_w, acc_s, cnt = carry                   # f32 scalar, (1, C) f32, i32 scalar
        w_i = w_smem[b, i]                          # scaled weight (scalar, SMEM)
        x_i = x_ref[0, pl.ds(i, 1), :]              # (1, C) current frame
        is_fired = (acc_w + w_i) >= threshold       # scalar bool
        remained = 1.0 - acc_w
        new_acc_w = jnp.where(is_fired, w_i - remained, w_i + acc_w)
        f = is_fired.astype(jnp.float32)            # scalar 0/1 blend (no vector predicate)
        new_acc_s = f * ((w_i - remained) * x_i) + (1.0 - f) * (acc_s + w_i * x_i)
        # PyTorch zeroes the fired state only for i > padding_start_id (strict)
        mark = jnp.logical_and(is_fired, i <= pstart)

        @pl.when(mark)
        def _():
            # scatter the fired frame into the next compacted output row
            cif_ref[0, pl.ds(cnt, 1), :] = acc_s + remained * x_i

        return new_acc_w, new_acc_s, cnt + mark.astype(jnp.int32)

    unroll = 8 if T % 8 == 0 else (4 if T % 4 == 0 else 1)
    _, _, cnt_final = lax.fori_loop(
        0, T, step,
        (jnp.float32(0.0), jnp.zeros((1, C), jnp.float32), jnp.int32(0)),
        unroll=unroll)
    cnt_ref[...] = jnp.full((1, 1, 1), cnt_final.astype(jnp.float32))


def cif_scan_pallas(w_bt, pstart, x, threshold):
    B, T, C = x.shape
    kernel = functools.partial(_cif_scan_kernel, threshold=threshold)
    return pl.pallas_call(
        kernel,
        out_shape=(jax.ShapeDtypeStruct((B, T, C), jnp.float32),   # compacted cif frames
                   jax.ShapeDtypeStruct((B, 1, 1), jnp.float32)),  # fired counts
        grid=(B,),
        in_specs=[
            pl.BlockSpec(memory_space=pltpu.MemorySpace.SMEM),     # scaled weights (B, T)
            pl.BlockSpec(memory_space=pltpu.MemorySpace.SMEM),     # padding_start_id (B,)
            pl.BlockSpec((1, T, C), lambda b: (b, 0, 0)),          # x
        ],
        out_specs=(pl.BlockSpec((1, T, C), lambda b: (b, 0, 0)),
                   pl.BlockSpec((1, 1, 1), lambda b: (b, 0, 0))),
        compiler_params=pltpu.CompilerParams(
            dimension_semantics=("parallel",),
            vmem_limit_bytes=_vmem_limit(8 * T * C * 4)),
    )(w_bt, pstart, x)


# --------------------------------------------------------------------------------------
# Wrapper (training-mode forward)
# --------------------------------------------------------------------------------------
def cif_middleware_forward(params, encoder_raw_out, encoder_padding_mask, target_lengths):
    """Training-mode forward of CifMiddleware (produce_weight_type='dense')."""
    B, T, C = encoder_raw_out.shape
    not_pad = jnp.logical_not(encoder_padding_mask)
    npad_f = not_pad.astype(jnp.float32)[:, :, None]               # (B, T, 1)
    pstart = jnp.sum(not_pad.astype(jnp.int32), axis=-1)           # (B,) padding_start_id
    tgt_i = target_lengths.astype(jnp.int32)                       # (B,)

    w_scaled, qty = weight_pallas(encoder_raw_out, npad_f, tgt_i,
                                  params["w1"], params["b1"], params["w2"], params["b2"])
    w_bt = w_scaled.reshape(B, T)                                  # free reshape -> SMEM input
    cif_full, cnt = cif_scan_pallas(w_bt, pstart, encoder_raw_out, CIF_THRESHOLD)
    return cif_full, qty.reshape(B), cnt.reshape(B)


if __name__ == "__main__":
    key = jax.random.PRNGKey(0)
    B, T, C = 2, 8, ENCODER_EMBED_DIM
    k_x, k_w1, k_b1, k_w2, k_b2 = jax.random.split(key, 5)
    params = {
        "w1": 0.2 * jax.random.normal(k_w1, (C, C), jnp.float32),   # dense_proj.weight^T
        "b1": 0.1 * jax.random.normal(k_b1, (1, C), jnp.float32),   # dense_proj.bias
        "w2": 0.2 * jax.random.normal(k_w2, (C, 1), jnp.float32),   # weight_proj.weight^T
        "b2": 0.1 * jax.random.normal(k_b2, (1, 1), jnp.float32),   # weight_proj.bias
    }
    encoder_raw_out = jax.random.normal(k_x, (B, T, C), jnp.float32)
    lengths = jnp.array([T, T - 2], dtype=jnp.int32)                 # valid frames per utt
    t_idx = jnp.arange(T)[None, :]
    encoder_padding_mask = t_idx >= lengths[:, None]                 # True on padded frames
    target_lengths = jnp.array([3, 2], dtype=jnp.int32)

    cif_full, quantity_out, counts = cif_middleware_forward(
        params, encoder_raw_out, encoder_padding_mask, target_lengths)
    jax.block_until_ready((cif_full, quantity_out, counts))

    counts_np = np.asarray(counts).astype(np.int32)
    fired_max_length = int(counts_np.max())                          # dynamic shape done on host
    cif_out = np.asarray(cif_full)[:, :fired_max_length, :]          # (B, fired_max_len, C)
    cif_out_padding_mask = (np.abs(cif_out).sum(-1) != 0.0).astype(np.int32)

    # sanity: quantity_out matches a plain numpy recomputation of the weight branch
    x_np = np.asarray(encoder_raw_out)
    h_np = np.maximum(x_np @ np.asarray(params["w1"]) + np.asarray(params["b1"]), 0.0)
    s_np = h_np @ np.asarray(params["w2"]) + np.asarray(params["b2"])
    w_np = (1.0 / (1.0 + np.exp(-s_np[..., 0]))) * (~np.asarray(encoder_padding_mask)).astype(np.float32)
    ref_quantity = w_np.sum(-1)
    assert np.allclose(np.asarray(quantity_out), ref_quantity, atol=5e-3)
    # sanity: compacted rows are exactly the fired frames followed by zero padding
    assert (cif_out_padding_mask.sum(-1) == counts_np).all()
    assert cif_out.shape == (B, fired_max_length, C)

    print("KERNEL_OK")
</pallas_src>

<mosaic_0001>
module attributes {stable_mosaic.version = 11 : i64} {
  func.func @_weight_kernel(%arg0: i32, %arg1: memref<1x8x32xf32, #tpu.memory_space<vmem>>, %arg2: memref<1x8x1xf32, #tpu.memory_space<vmem>>, %arg3: memref<2xi32, #tpu.memory_space<smem>>, %arg4: memref<32x32xf32, #tpu.memory_space<vmem>>, %arg5: memref<1x32xf32, #tpu.memory_space<vmem>>, %arg6: memref<32x1xf32, #tpu.memory_space<vmem>>, %arg7: memref<1x1xf32, #tpu.memory_space<vmem>>, %arg8: memref<1x8x1xf32, #tpu.memory_space<vmem>>, %arg9: memref<1x1x1xf32, #tpu.memory_space<vmem>>) attributes {dimension_semantics = [#tpu.dimension_semantics<parallel>], iteration_bounds = array<i64: 2>, scalar_prefetch = 0 : i64, scratch_operands = 0 : i64, tpu.core_type = #tpu.core_type<tc>, window_params = [{transform_indices = @transform_0, window_bounds = array<i64: 1, 8, 32>}, {transform_indices = @transform_1, window_bounds = array<i64: 1, 8, 1>}, {transform_indices = @transform_2, window_bounds = array<i64: 2>}, {pipeline_mode = #tpu.pipeline_mode<synchronous>, transform_indices = @transform_3, window_bounds = array<i64: 32, 32>}, {pipeline_mode = #tpu.pipeline_mode<synchronous>, transform_indices = @transform_4, window_bounds = array<i64: 1, 32>}, {pipeline_mode = #tpu.pipeline_mode<synchronous>, transform_indices = @transform_5, window_bounds = array<i64: 32, 1>}, {pipeline_mode = #tpu.pipeline_mode<synchronous>, transform_indices = @transform_6, window_bounds = array<i64: 1, 1>}, {transform_indices = @transform_7, window_bounds = array<i64: 1, 8, 1>}, {transform_indices = @transform_8, window_bounds = array<i64: 1, 1, 1>}]} {
    %c0 = arith.constant 0 : index
    %c0_0 = arith.constant 0 : index
    %c0_1 = arith.constant 0 : index
    %0 = vector.load %arg1[%c0, %c0_0, %c0_1] : memref<1x8x32xf32, #tpu.memory_space<vmem>>, vector<1x8x32xf32>
    %1 = vector.shape_cast %0 : vector<1x8x32xf32> to vector<8x32xf32>
    %c0_2 = arith.constant 0 : index
    %c0_3 = arith.constant 0 : index
    %2 = vector.load %arg4[%c0_2, %c0_3] : memref<32x32xf32, #tpu.memory_space<vmem>>, vector<32x32xf32>
    %cst = arith.constant dense<0.000000e+00> : vector<8x32xf32>
    %3 = tpu.matmul %1, %2, %cst {dimension_numbers = #tpu.dot_dimension_numbers<[1], [0], [0], [1], [0, 0, 1, 1], [], []>} : vector<8x32xf32>, vector<32x32xf32>, vector<8x32xf32> -> vector<8x32xf32>
    %c0_4 = arith.constant 0 : index
    %c0_5 = arith.constant 0 : index
    %4 = vector.load %arg5[%c0_4, %c0_5] : memref<1x32xf32, #tpu.memory_space<vmem>>, vector<1x32xf32>
    %5 = vector.broadcast %4 : vector<1x32xf32> to vector<8x32xf32>
    %6 = arith.addf %3, %5 : vector<8x32xf32>
    %cst_6 = arith.constant 0.000000e+00 : f32
    %7 = vector.broadcast %cst_6 : f32 to vector<8x32xf32>
    %8 = arith.maximumf %6, %7 : vector<8x32xf32>
    %c0_7 = arith.constant 0 : index
    %c0_8 = arith.constant 0 : index
    %9 = vector.load %arg6[%c0_7, %c0_8] : memref<32x1xf32, #tpu.memory_space<vmem>>, vector<32x1xf32>
    %cst_9 = arith.constant dense<0.000000e+00> : vector<8x1xf32>
    %10 = tpu.matmul %8, %9, %cst_9 {dimension_numbers = #tpu.dot_dimension_numbers<[1], [0], [0], [1], [0, 0, 1, 1], [], []>} : vector<8x32xf32>, vector<32x1xf32>, vector<8x1xf32> -> vector<8x1xf32>
    %c0_10 = arith.constant 0 : index
    %c0_11 = arith.constant 0 : index
    %11 = vector.load %arg7[%c0_10, %c0_11] : memref<1x1xf32, #tpu.memory_space<vmem>>, vector<1x1xf32>
    %12 = vector.broadcast %11 : vector<1x1xf32> to vector<8x1xf32>
    %13 = arith.addf %10, %12 : vector<8x1xf32>
    %14 = arith.negf %13 : vector<8x1xf32>
    %15 = math.exp %14 : vector<8x1xf32>
    %cst_12 = arith.constant 1.000000e+00 : f32
    %16 = vector.broadcast %cst_12 : f32 to vector<8x1xf32>
    %17 = arith.addf %16, %15 : vector<8x1xf32>
    %18 = arith.divf %16, %17 : vector<8x1xf32>
    %c0_13 = arith.constant 0 : index
    %c0_14 = arith.constant 0 : index
    %c0_15 = arith.constant 0 : index
    %19 = vector.load %arg2[%c0_13, %c0_14, %c0_15] : memref<1x8x1xf32, #tpu.memory_space<vmem>>, vector<1x8x1xf32>
    %20 = vector.shape_cast %19 : vector<1x8x1xf32> to vector<8x1xf32>
    %21 = arith.mulf %18, %20 : vector<8x1xf32>
    %cst_16 = arith.constant dense<0.000000e+00> : vector<1xf32>
    %22 = vector.multi_reduction <add>, %21, %cst_16 [0] : vector<8x1xf32> to vector<1xf32>
    %23 = vector.shape_cast %22 : vector<1xf32> to vector<1x1xf32>
    %c0_17 = arith.constant 0 : index
    %c0_18 = arith.constant 0 : index
    %c0_19 = arith.constant 0 : index
    %24 = vector.load %arg9[%c0_17, %c0_18, %c0_19] : memref<1x1x1xf32, #tpu.memory_space<vmem>>, vector<1x1x1xf32>
    %25 = vector.shape_cast %24 : vector<1x1x1xf32> to vector<1x1xf32>
    %26 = vector.shape_cast %23 : vector<1x1xf32> to vector<1x1x1xf32>
    tpu.vector_store %arg9[%c0_17, %c0_18, %c0_19], %26 {strides = array<i32>} : memref<1x1x1xf32, #tpu.memory_space<vmem>>, vector<1x1x1xf32>,
    %27 = arith.index_cast %arg0 : i32 to index
    %28 = memref.load %arg3[%27] : memref<2xi32, #tpu.memory_space<smem>>
    %29 = arith.sitofp %28 : i32 to f32
    %cst_20 = arith.constant 0.000000e+00 : f32
    %30 = vector.broadcast %cst_20 : f32 to vector<1x1xf32>
    %31 = arith.cmpf ogt, %23, %30 : vector<1x1xf32>
    %cst_21 = arith.constant 9.99999997E-7 : f32
    %32 = vector.broadcast %cst_21 : f32 to vector<1x1xf32>
    %33 = arith.maximumf %23, %32 : vector<1x1xf32>
    %34 = vector.broadcast %29 : f32 to vector<1x1xf32>
    %35 = arith.divf %34, %33 : vector<1x1xf32>
    %cst_22 = arith.constant 0.000000e+00 : f32
    %36 = vector.broadcast %cst_22 : f32 to vector<1x1xf32>
    %37 = arith.select %31, %35, %36 : vector<1x1xi1>, vector<1x1xf32>
    %38 = vector.broadcast %37 : vector<1x1xf32> to vector<8x1xf32>
    %39 = arith.mulf %21, %38 : vector<8x1xf32>
    %c0_23 = arith.constant 0 : index
    %c0_24 = arith.constant 0 : index
    %c0_25 = arith.constant 0 : index
    %40 = vector.load %arg8[%c0_23, %c0_24, %c0_25] : memref<1x8x1xf32, #tpu.memory_space<vmem>>, vector<1x8x1xf32>
    %41 = vector.shape_cast %40 : vector<1x8x1xf32> to vector<8x1xf32>
    %42 = vector.shape_cast %39 : vector<8x1xf32> to vector<1x8x1xf32>
    tpu.vector_store %arg8[%c0_23, %c0_24, %c0_25], %42 {strides = array<i32>} : memref<1x8x1xf32, #tpu.memory_space<vmem>>, vector<1x8x1xf32>,
    return
  }
  func.func @transform_0(%arg0: i32) -> (i32, i32, i32) {
    %c0_i32 = arith.constant 0 : i32
    %c0_i32_0 = arith.constant 0 : i32
    %c0_i32_1 = arith.constant 0 : i32
    return %arg0, %c0_i32, %c0_i32_0 : i32, i32, i32
  }
  func.func @transform_1(%arg0: i32) -> (i32, i32, i32) {
    %c0_i32 = arith.constant 0 : i32
    %c0_i32_0 = arith.constant 0 : i32
    %c0_i32_1 = arith.constant 0 : i32
    return %arg0, %c0_i32, %c0_i32_0 : i32, i32, i32
  }
  func.func @transform_2(%arg0: i32) -> i32 {
    %c0_i32 = arith.constant 0 : i32
    %c0_i32_0 = arith.constant 0 : i32
    return %c0_i32 : i32
  }
  func.func @transform_3(%arg0: i32) -> (i32, i32) {
    %c0_i32 = arith.constant 0 : i32
    %c0_i32_0 = arith.constant 0 : i32
    %c0_i32_1 = arith.constant 0 : i32
    return %c0_i32, %c0_i32_0 : i32, i32
  }
  func.func @transform_4(%arg0: i32) -> (i32, i32) {
    %c0_i32 = arith.constant 0 : i32
    %c0_i32_0 = arith.constant 0 : i32
    %c0_i32_1 = arith.constant 0 : i32
    return %c0_i32, %c0_i32_0 : i32, i32
  }
  func.func @transform_5(%arg0: i32) -> (i32, i32) {
    %c0_i32 = arith.constant 0 : i32
    %c0_i32_0 = arith.constant 0 : i32
    %c0_i32_1 = arith.constant 0 : i32
    return %c0_i32, %c0_i32_0 : i32, i32
  }
  func.func @transform_6(%arg0: i32) -> (i32, i32) {
    %c0_i32 = arith.constant 0 : i32
    %c0_i32_0 = arith.constant 0 : i32
    %c0_i32_1 = arith.constant 0 : i32
    return %c0_i32, %c0_i32_0 : i32, i32
  }
  func.func @transform_7(%arg0: i32) -> (i32, i32, i32) {
    %c0_i32 = arith.constant 0 : i32
    %c0_i32_0 = arith.constant 0 : i32
    %c0_i32_1 = arith.constant 0 : i32
    return %arg0, %c0_i32, %c0_i32_0 : i32, i32, i32
  }
  func.func @transform_8(%arg0: i32) -> (i32, i32, i32) {
    %c0_i32 = arith.constant 0 : i32
    %c0_i32_0 = arith.constant 0 : i32
    %c0_i32_1 = arith.constant 0 : i32
    return %arg0, %c0_i32, %c0_i32_0 : i32, i32, i32
  }
}

</mosaic_0001>

<bundles_post_ra>
// kernel: tpu_custom_call.1
= control target key start
LH: loop header
LB: loop body
LE: loop exit
PB: predicated region body
PF: predicated region fallthrough
CT: control target
= control target key end

     0   :  { %s884_s0 = inlined_call_operand.vmem [shape: f32[2,8,32], index: 0, kind: input, shape index: {}]   ;;  %s885_s1 = inlined_call_operand.vmem [shape: f32[2,8,1], index: 1, kind: input, shape index: {}]   ;;  %s886_s2 = inlined_call_operand.vmem [shape: s32[2], index: 2, kind: input, shape index: {}]   ;;  %s887_s3 = inlined_call_operand.vmem [shape: f32[32,32], index: 3, kind: input, shape index: {}]   ;;  %s888_s4 = inlined_call_operand.vmem [shape: f32[1,32], index: 4, kind: input, shape index: {}]   ;;  %s889_s5 = inlined_call_operand.vmem [shape: f32[32,1], index: 5, kind: input, shape index: {}]   ;;  %s890_s6 = inlined_call_operand.<no memory space> [shape: f32[1,1], index: 6, kind: input, shape index: {}]   ;;  %s891_s7 = inlined_call_operand.vmem [shape: f32[2,8,1], index: 7, kind: output, shape index: {0}]   ;;  %s892_s8 = inlined_call_operand.vmem [shape: f32[2,1,1], index: 8, kind: output, shape index: {1}]  }
   0x1   :  { %v14_v0 = vstv %s890_s6 }
   0x2   :  { %15 = vst [vmem:[#allocation2] sm:$0x1] %v14_v0 }
   0x3   :  { %16 = vsyncpa [#allocation4], 0  ;;  %s798_s29 = smov 0  }
   0x4 LB: > { %s804_s30 = sadd.s32 4294967295, %s745_s29   ;;  %p646_p0 = scmp.ge.s32.totalorder %s745_s29, 1  ;;  %s745_s29 = sphi %s798_s29, %s22_s29  }
   0x5   : > { %p236_p1 = scmp.lt.s32.totalorder %s745_s29, 3  ;;  %s249_s10 = sshll.u32 %s886_s2, 4  ;;  %s250_s10 = int_to_ptr.vmem [resolvable:$true] %s249_s10 }
   0x6   : > { %p701_p3 = scmp.eq.s32.totalorder %s804_s30, 0  ;;  %s720_s12 = scalar_lea.vmem %s250_s10, 16 }
   0x7   : > { %p811_p2 = pnand %p646_p0, %p236_p1  ;;  %p721_p6 = scmp.ne.s32.totalorder %s250_s10, %s720_s12 }
   0x8   : > { %p728_p10 = scmp.lt.s32.totalorder %s250_s10, %s250_s10  ;;  %p729_p11 = scmp.lt.s32.totalorder %s720_s12, %s720_s12 }
   0x9   : > { %p697_p4 = pneg %p811_p2 }
   0xa   : > { %p730_p12 = por %p729_p11, %p728_p10 }
   0xb   : > { %p698_p5 = pnand %p701_p3, %p697_p4 }
   0xd   : > { %p722_p7 = pneg %p698_p5 }
   0xf   : > { %p723_p8 = pnand %p722_p7, %p721_p6 }
  0x11   : > { %p724_p9 = pneg %p723_p8 }
  0x13   : > { %p731_p13 = pnand %p730_p12, %p724_p9 }
  0x15   : > { %734 = shalt.err (!%p731_p13)
}
  0x16   : > { %s747_s13 = smov [#allocation3]   ;;  %288 = sbr.rel (%p811_p2) target bundleno = 500 (0x1f4), region = 48 }
  0x17   : > { %700 = dma.vmem_to_smem (!%p698_p5), %s250_s10, 16, %s747_s13, [#allocation4]  }
  0x1b   : > { %740 = dma.done.wait (%p701_p3), [#allocation4], 16  }
  0x1c   : > { %742 = vsyncadd (%p701_p3), [#allocation4], 4294967280 }
  0x1d   : > { %294 = sfence }
  0x1e   : > { %v347_v1 = vld [vmem:[%s887_s3 + $0x18] sm:$0xff]  ;;  %p328_p0 = scmp.lt.s32.totalorder %s804_s30, 1  ;;  %v748_v2 = vmov 0.0   ;;  %v346_v3 = vld [vmem:[%s887_s3 + $0x10] sm:$0xff]  ;;  %vm749_vm0 = vmmov 0   ;;  %v345_v5 = vld [vmem:[%s887_s3 + $0x8] sm:$0xff] }
  0x1f   : > { %671 = vmatprep.subr.mxu0 %v748_v2  ;;  %679 = vmatprep.mubr.msk.f32.mxu0 %vm749_vm0, %v748_v2  ;;  %v433_v4 = vld [vmem:[%s889_s5 + $0x18] sm:$0xff]  ;;  %v344_v6 = vld [vmem:[%s887_s3] sm:$0xff]  ;;  %vm355_vm1 = vcmask 261120   ;;  %v432_v8 = vld [vmem:[%s889_s5 + $0x10] sm:$0xff]  ;;  %vm522_vm2 = vcmask 7168   ;;  %vm530_vm3 = vcmask 0  }
  0x20   : > { %672 = vmatpush3.msra.mxu0 %v347_v1  ;;  %s837_s20 = scalar_select %p328_p0, %s804_s30, 1  ;;  %682 = vmatprep.subr.mxu1 %v748_v2  ;;  %v431_v9 = vld [vmem:[%s889_s5 + $0x8] sm:$0xff]  ;;  %v430_v10 = vld [vmem:[%s889_s5] sm:$0xff] }
  0x21   : > { %673 = vmatprep.subr.mxu0 %v748_v2  ;;  %683 = vmatpush3.msra.mxu1 %v433_v4  ;;  %v654_v11 = vld [vmem:[%s888_s4] ss:$0 sm:$0xff]  ;;  %s532_s24 = sld [smem:[#allocation3 + %s804_s30]] }
  0x22   : > { %674 = vmatpush3.msra.mxu0 %v346_v3  ;;  %s843_s23 = sshll.u32 %s837_s20, 3  ;;  %684 = vmatprep.subr.mxu1 %v748_v2  ;;  %v656_v16 = vld [vmem:[#allocation2] ss:$0 sm:$0xff]  ;;  %s342_s22 = scalar_lea.vmem %s892_s8, %s837_s20 }
  0x23   : > { %675 = vmatprep.subr.mxu0 %v748_v2  ;;  %s331_s28 = scalar_lea.vmem %s884_s0, %s843_s23  ;;  %690 = vmatprep.mubr.msk.f32.mxu1 %vm749_vm0, %v748_v2  ;;  %s335_s18 = scalar_lea.vmem %s885_s1, %s843_s23 }
  0x24   : > { %676 = vmatpush3.msra.mxu0 %v345_v5  ;;  %v343_v7 = vld [vmem:[%s331_s28] sm:$0xff]  ;;  %685 = vmatpush3.msra.mxu1 %v432_v8  ;;  %s339_s28 = scalar_lea.vmem %s891_s7, %s843_s23 }
  0x25   : > { %677 = vmatprep.subr.mxu0 %v748_v2  ;;  %686 = vmatprep.subr.mxu1 %v748_v2  ;;  %v520_v23 = vld [vmem:[%s335_s18] sm:$0xff] }
  0x26   : > { %678 = vmatpush3.msra.mxu0 %v344_v6  ;;  %687 = vmatpush3.msra.mxu1 %v431_v9 }
  0x27   : > { %680 = vmatmul.mubr.msk.f32.vlgmr.msra.gmra.mxu0 %vm355_vm1, %v343_v7  ;;  %688 = vmatprep.subr.mxu1 %v748_v2  ;;  %s533_s25 = scvt.s32.f32 %s532_s24 }
  0x28   : > { %689 = vmatpush3.msra.mxu1 %v430_v10 }
  0x29   : > { %v536_v34 = vstv %s533_s25 }
  0xe7   : > { %v425_v12 = vpop.f32.mrf.mxu0 }
  0xe8   : > { %v426_v13 = vadd.f32 %v654_v11, %v425_v12 }
  0xe9   : > { %v681_v14 = vpop.f32.mrf.mxu0 }
  0xea   : > { %v429_v15 = vmax.f32 %v426_v13, 0.0 }
  0xec   : > { %691 = vmatmul.mubr.msk.f32.vlgmr.msra.gmra.mxu1 %vm355_vm1, %v429_v15 }
 0x1ac   : > { %v510_v17 = vpop.f32.mrf.mxu1 }
 0x1ad   : > { %v511_v18 = vadd.f32 %v656_v16, %v510_v17 }
 0x1ae   : > { %v692_v19 = vpop.f32.mrf.mxu1 }
 0x1af   : > { %v658_v20 = vmul.f32 -1.442695, %v511_v18 }
 0x1b1   : > { %714 = vpow2.f32 %v658_v20 }
 0x1be   : > { %v715_v21 = vpop.eup %714 }
 0x1bf   : > { %v517_v22 = vadd.f32 1.0, %v715_v21 }
 0x1c1   : > { %716 = vrcp.f32 %v517_v22 }
 0x1ce   : > { %v717_v24 = vpop.eup %716 }
 0x1cf   : > { %v521_v25 = vmul.f32 %v717_v24, %v520_v23 }
 0x1d1   : > { %v523_v26 = vsel %vm522_vm2, %v521_v25, 0.0 }
 0x1d2   : > { %v524_v27 = vrot.slane %v523_v26, 4 }
 0x1d4   : > { %v525_v28 = vadd.f32 %v524_v27, %v523_v26 }
 0x1d6   : > { %v526_v29 = vrot.slane %v525_v28, 2 }
 0x1d8   : > { %v527_v30 = vadd.f32 %v526_v29, %v525_v28 }
 0x1da   : > { %v528_v31 = vrot.slane %v527_v30, 1 }
 0x1dc   : > { %v529_v32 = vadd.f32 %v528_v31, %v527_v30 }
 0x1de   : > { %531 = vst.msk [vmem:[%s342_s22] sm:$0x1] %vm530_vm3, %v529_v32  ;;  %v535_v33 = vmax.f32 %v529_v32, 1e-06  ;;  %vm534_vm4 = vcmp.gt.f32.partialorder %v529_v32, 0.0 }
 0x1e0   : > { %718 = vrcp.f32 %v535_v33 }
 0x1ed   : > { %v719_v35 = vpop.eup %718 }
 0x1ee   : > { %v538_v36 = vmul.f32 %v719_v35, %v536_v34 }
 0x1f0   : > { %v539_v37 = vsel %vm534_vm4, %v538_v36, 0.0 }
 0x1f1   : > { %v540_v38 = vmul.f32 %v539_v37, %v521_v25 }
 0x1f3   : > { %541 = vst.msk [vmem:[%s339_s28] sm:$0xff] %vm522_vm2, %v540_v38 }
 0x1f4 PF: > { %s22_s29 = sadd.s32 1, %s745_s29  }
 0x1f5   : > { %p19_p1 = scmp.ge.s32.totalorder %s22_s29, 4  }
 0x1f7   :  { %21 = sbr.rel (!%p19_p1) target bundleno = 4 (0x4), region = 98 }
 0x1fc   :  { %573 = vsyncpa [#allocation4], 1 }
 0x1fd   :  { %575 = vsyncpa [#allocation4 + $0x1], 1 }

</bundles_post_ra>
